<compile_context>
chip_gen: v7x
topology: tpu7x:2x2x1
jax: 0.10.0
libtpu: 0.0.40
codegen_flags: <defaults>
</compile_context>

<pallas_src>
import jax
import jax.numpy as jnp
from jax.experimental import pallas as pl
from jax.experimental.pallas import tpu as pltpu

EPS = 1e-3
_VMEM_CAP_BYTES = 48 << 20          # leave headroom below v7x's 64 MiB per-TC VMEM


def _round_up(x, m):
    return (x + m - 1) // m * m


def _pick_tile(dim, candidates, slack=0.125):
    """Pick the largest candidate tile whose padded size is within `slack` of the minimum
    achievable padded size (bounds padding waste instead of always taking the biggest tile)."""
    padded = [(_round_up(dim, c), c) for c in candidates]
    best = min(p for p, _ in padded)
    allowed = best * (1.0 + slack)
    return max(c for p, c in padded if p <= allowed)


# ----------------------------------------------------------------------------------------------
# Kernel: one (tm, tn) output tile, K tiled along the last ("arbitrary") grid axis.
# ----------------------------------------------------------------------------------------------
def linlayer_kernel(x_ref, w_ref, p_ref, o_ref, acc_ref):
    k = pl.program_id(2)

    @pl.when(k == 0)
    def _():
        acc_ref[...] = jnp.zeros_like(acc_ref)

    # Linear partial product on the MXU, f32 accumulation.
    acc_ref[...] += jnp.dot(x_ref[...], w_ref[...], preferred_element_type=jnp.float32)

    @pl.when(k == pl.num_programs(2) - 1)
    def _():
        p = p_ref[...]                       # (8, tn): row 0 = bias, 1 = scale, 2 = shift
        bias, scale, shift = p[0:1, :], p[1:2, :], p[2:3, :]
        h = jnp.maximum(acc_ref[...] + bias, 0.0)        # bias + ReLU (VPU)
        o_ref[...] = (h * scale + shift).astype(o_ref.dtype)   # folded BatchNorm (eval)
        # Dropout: identity in eval mode.


# ----------------------------------------------------------------------------------------------
# One-time parameter preparation (hoisted out of the forward path).
# ----------------------------------------------------------------------------------------------
def prepare_linlayer_params(w, b, gamma, beta, running_mean, running_var,
                            *, eps=EPS, weight_dtype=jnp.float32):
    """w: (out_chn, in_chn) torch Linear layout. Returns a dict with the padded, transposed
    weight, the packed bias/scale/shift params and the tiling metadata."""
    N, K = w.shape

    # Fold BatchNorm (eval) into scale / shift once.
    scale = gamma * jax.lax.rsqrt(running_var + eps)
    shift = beta - running_mean * scale

    # Feature / reduction tile selection (padding-waste bounded).
    tn = _pick_tile(N, (512, 384, 256, 128))
    N_pad = _round_up(N, tn)
    tk = _pick_tile(K, (2048, 1024, 512, 256, 128))
    K_pad = _round_up(K, tk)

    w_p = (jnp.zeros((K_pad, N_pad), jnp.float32)
           .at[:K, :N].set(w.astype(jnp.float32).T)
           .astype(weight_dtype))
    params = (jnp.zeros((8, N_pad), jnp.float32)
              .at[0, :N].set(b)
              .at[1, :N].set(scale)
              .at[2, :N].set(shift))

    return dict(w=w_p, params=params, tn=tn, tk=tk, N=N, K=K, N_pad=N_pad, K_pad=K_pad)


# ----------------------------------------------------------------------------------------------
# Forward pass.
# ----------------------------------------------------------------------------------------------
def lin_layer_forward(x, prepared, *, activation_dtype=None, out_dtype=jnp.float32):
    """x: (B, in_chn). `prepared` comes from prepare_linlayer_params()."""
    B, K = x.shape
    assert K == prepared["K"], (K, prepared["K"])

    w_p, params = prepared["w"], prepared["params"]
    tn, tk = prepared["tn"], prepared["tk"]
    N, N_pad, K_pad = prepared["N"], prepared["N_pad"], prepared["K_pad"]

    x_dtype = jnp.dtype(activation_dtype) if activation_dtype is not None else w_p.dtype

    # Batch tile selection (padding-waste bounded).
    tm = _pick_tile(B, (256, 128, 64, 32, 16, 8))
    B_pad = _round_up(B, tm)

    nN, nB, nK = N_pad // tn, B_pad // tm, K_pad // tk

    # v7x megacore: expose at least 2 tiles on a parallel axis when possible.
    if nN * nB == 1:
        if tm >= 16:
            tm //= 2
        elif tn >= 256:
            tn //= 2
        nN, nB = N_pad // tn, B_pad // tm

    # Pad activations (only copy if needed).
    if (B_pad, K_pad) != (B, K) or x.dtype != x_dtype:
        x_p = jnp.zeros((B_pad, K_pad), x_dtype).at[:B, :K].set(x.astype(x_dtype))
    else:
        x_p = x

    # Grid ordering: when K fits in one tile, keep the cheaper-to-re-stream operand streaming
    # and the other VMEM-resident. (With nK > 1 both operands re-stream regardless.)
    feature_outer = (nN - 1) * B_pad <= (nB - 1) * N_pad or nK > 1
    if feature_outer:
        grid = (nN, nB, nK)
        x_map = lambda j, i, k: (i, k)
        w_map = lambda j, i, k: (k, j)
        p_map = lambda j, i, k: (0, j)
        o_map = lambda j, i, k: (i, j)
    else:
        grid = (nB, nN, nK)
        x_map = lambda i, j, k: (i, k)
        w_map = lambda i, j, k: (k, j)
        p_map = lambda i, j, k: (0, j)
        o_map = lambda i, j, k: (i, j)

    # VMEM budget: double-buffered x / w / params / out + accumulator scratch.
    x_isz = jnp.dtype(x_dtype).itemsize
    w_isz = jnp.dtype(w_p.dtype).itemsize
    footprint = (2 * tm * tk * x_isz + 2 * tk * tn * w_isz
                 + 2 * 8 * tn * 4 + 2 * tm * tn * 4 + tm * tn * 4)
    assert footprint <= _VMEM_CAP_BYTES, f"tile working set {footprint} exceeds VMEM budget"
    vmem_limit = int(min(max(int(footprint * 1.25), 1 << 20), _VMEM_CAP_BYTES))

    # Cost estimate including operand re-stream factors.
    x_reads = (1 if (nK == 1 and not feature_outer) else nN) * B_pad * K_pad * x_isz
    w_reads = (1 if (nK == 1 and feature_outer) else nB) * K_pad * N_pad * w_isz
    cost = pl.CostEstimate(
        flops=2 * B_pad * K_pad * N_pad,
        transcendentals=0,
        bytes_accessed=x_reads + w_reads + params.size * 4
                       + B_pad * N_pad * jnp.dtype(out_dtype).itemsize,
    )

    out_p = pl.pallas_call(
        linlayer_kernel,
        out_shape=jax.ShapeDtypeStruct((B_pad, N_pad), out_dtype),
        grid_spec=pltpu.PrefetchScalarGridSpec(
            num_scalar_prefetch=0,
            grid=grid,
            in_specs=[
                pl.BlockSpec((tm, tk), x_map),   # activations
                pl.BlockSpec((tk, tn), w_map),   # weights
                pl.BlockSpec((8, tn), p_map),    # packed bias/scale/shift
            ],
            out_specs=pl.BlockSpec((tm, tn), o_map),
            scratch_shapes=[pltpu.VMEM((tm, tn), jnp.float32)],
        ),
        compiler_params=pltpu.CompilerParams(
            dimension_semantics=("parallel", "parallel", "arbitrary"),
            vmem_limit_bytes=vmem_limit,
        ),
        cost_estimate=cost,
    )(x_p, w_p, params)

    return out_p[:B, :N]


def init_params(key, in_chn, out_chn):
    """torch.nn.Linear-style U(-1/sqrt(in), 1/sqrt(in)) init plus non-trivial BN stats."""
    k_w, k_b, k_g, k_be, k_m, k_v = jax.random.split(key, 6)
    bound = 1.0 / jnp.sqrt(jnp.float32(in_chn))
    w = jax.random.uniform(k_w, (out_chn, in_chn), jnp.float32, -bound, bound)
    b = jax.random.uniform(k_b, (out_chn,), jnp.float32, -bound, bound)
    gamma = jax.random.uniform(k_g, (out_chn,), jnp.float32, 0.5, 1.5)
    beta = 0.1 * jax.random.normal(k_be, (out_chn,), jnp.float32)
    running_mean = 0.1 * jax.random.normal(k_m, (out_chn,), jnp.float32)
    running_var = jax.random.uniform(k_v, (out_chn,), jnp.float32, 0.5, 1.5)
    return w, b, gamma, beta, running_mean, running_var


if __name__ == "__main__":
    key = jax.random.PRNGKey(0)
    k_x, k_p = jax.random.split(key)

    B, in_chn, out_chn = 8, 32, 16
    x = jax.random.normal(k_x, (B, in_chn), jnp.float32)
    w, b, gamma, beta, rmean, rvar = init_params(k_p, in_chn, out_chn)

    # One-time weight / params preparation (hoisted out of the forward path).
    prepared = prepare_linlayer_params(w, b, gamma, beta, rmean, rvar)

    out = lin_layer_forward(x, prepared)
    out = jax.block_until_ready(out)

    # Pure-JAX reference of the eval-mode module (unfolded BN, f32).
    ref = jnp.maximum(x @ w.T + b[None, :], 0.0)
    ref = gamma[None, :] * (ref - rmean[None, :]) * jax.lax.rsqrt(rvar[None, :] + EPS) + beta[None, :]

    assert out.shape == (B, out_chn)
    assert jnp.allclose(out, ref, atol=1e-4, rtol=1e-4), float(jnp.max(jnp.abs(out - ref)))

    print("KERNEL_OK")
</pallas_src>

<mosaic_0001>
module attributes {stable_mosaic.version = 11 : i64} {
  func.func @linlayer_kernel(%arg0: i32, %arg1: i32, %arg2: i32, %arg3: memref<8x128xf32, #tpu.memory_space<vmem>>, %arg4: memref<128x128xf32, #tpu.memory_space<vmem>>, %arg5: memref<8x128xf32, #tpu.memory_space<vmem>>, %arg6: memref<8x128xf32, #tpu.memory_space<vmem>>, %arg7: memref<8x128xf32, #tpu.memory_space<vmem>>) attributes {dimension_semantics = [#tpu.dimension_semantics<parallel>, #tpu.dimension_semantics<parallel>, #tpu.dimension_semantics<arbitrary>], iteration_bounds = array<i64: 1, 1, 1>, scalar_prefetch = 0 : i64, scratch_operands = 1 : i64, tpu.core_type = #tpu.core_type<tc>, window_params = [{transform_indices = @transform_0, window_bounds = array<i64: 8, 128>}, {transform_indices = @transform_1, window_bounds = array<i64: 128, 128>}, {transform_indices = @transform_2, window_bounds = array<i64: 8, 128>}, {transform_indices = @transform_3, window_bounds = array<i64: 8, 128>}]} {
    %c0_i32 = arith.constant 0 : i32
    %0 = arith.cmpi eq, %arg2, %c0_i32 : i32
    %1 = arith.extui %0 : i1 to i32
    %c0_i32_0 = arith.constant 0 : i32
    %2 = arith.cmpi ne, %1, %c0_i32_0 : i32
    scf.if %2 {
      %cst_10 = arith.constant 0.000000e+00 : f32
      %12 = vector.broadcast %cst_10 : f32 to vector<8x128xf32>
      %c0_11 = arith.constant 0 : index
      %c0_12 = arith.constant 0 : index
      %13 = vector.load %arg7[%c0_11, %c0_12] : memref<8x128xf32, #tpu.memory_space<vmem>>, vector<8x128xf32>
      tpu.vector_store %arg7[%c0_11, %c0_12], %12 {strides = array<i32>} : memref<8x128xf32, #tpu.memory_space<vmem>>, vector<8x128xf32>,
    } else {
    }
    %c0 = arith.constant 0 : index
    %c0_1 = arith.constant 0 : index
    %3 = vector.load %arg7[%c0, %c0_1] : memref<8x128xf32, #tpu.memory_space<vmem>>, vector<8x128xf32>
    %c0_2 = arith.constant 0 : index
    %c0_3 = arith.constant 0 : index
    %4 = vector.load %arg3[%c0_2, %c0_3] : memref<8x128xf32, #tpu.memory_space<vmem>>, vector<8x128xf32>
    %c0_4 = arith.constant 0 : index
    %c0_5 = arith.constant 0 : index
    %5 = vector.load %arg4[%c0_4, %c0_5] : memref<128x128xf32, #tpu.memory_space<vmem>>, vector<128x128xf32>
    %cst = arith.constant dense<0.000000e+00> : vector<8x128xf32>
    %6 = tpu.matmul %4, %5, %cst {dimension_numbers = #tpu.dot_dimension_numbers<[1], [0], [0], [1], [0, 0, 1, 1], [], []>} : vector<8x128xf32>, vector<128x128xf32>, vector<8x128xf32> -> vector<8x128xf32>
    %7 = arith.addf %3, %6 : vector<8x128xf32>
    %c0_6 = arith.constant 0 : index
    %c0_7 = arith.constant 0 : index
    %8 = vector.load %arg7[%c0_6, %c0_7] : memref<8x128xf32, #tpu.memory_space<vmem>>, vector<8x128xf32>
    tpu.vector_store %arg7[%c0_6, %c0_7], %7 {strides = array<i32>} : memref<8x128xf32, #tpu.memory_space<vmem>>, vector<8x128xf32>,
    %c0_i32_8 = arith.constant 0 : i32
    %9 = arith.cmpi eq, %arg2, %c0_i32_8 : i32
    %10 = arith.extui %9 : i1 to i32
    %c0_i32_9 = arith.constant 0 : i32
    %11 = arith.cmpi ne, %10, %c0_i32_9 : i32
    scf.if %11 {
      %c0_10 = arith.constant 0 : index
      %c0_11 = arith.constant 0 : index
      %12 = vector.load %arg5[%c0_10, %c0_11] : memref<8x128xf32, #tpu.memory_space<vmem>>, vector<8x128xf32>
      %13 = vector.extract_strided_slice %12 {offsets = [0, 0], sizes = [1, 128], strides = [1, 1]} : vector<8x128xf32> to vector<1x128xf32>
      %14 = vector.extract_strided_slice %12 {offsets = [1, 0], sizes = [1, 128], strides = [1, 1]} : vector<8x128xf32> to vector<1x128xf32>
      %15 = vector.extract_strided_slice %12 {offsets = [2, 0], sizes = [1, 128], strides = [1, 1]} : vector<8x128xf32> to vector<1x128xf32>
      %c0_12 = arith.constant 0 : index
      %c0_13 = arith.constant 0 : index
      %16 = vector.load %arg7[%c0_12, %c0_13] : memref<8x128xf32, #tpu.memory_space<vmem>>, vector<8x128xf32>
      %17 = vector.broadcast %13 : vector<1x128xf32> to vector<8x128xf32>
      %18 = arith.addf %16, %17 : vector<8x128xf32>
      %cst_14 = arith.constant 0.000000e+00 : f32
      %19 = vector.broadcast %cst_14 : f32 to vector<8x128xf32>
      %20 = arith.maximumf %18, %19 : vector<8x128xf32>
      %21 = vector.broadcast %14 : vector<1x128xf32> to vector<8x128xf32>
      %22 = arith.mulf %20, %21 : vector<8x128xf32>
      %23 = vector.broadcast %15 : vector<1x128xf32> to vector<8x128xf32>
      %24 = arith.addf %22, %23 : vector<8x128xf32>
      %c0_15 = arith.constant 0 : index
      %c0_16 = arith.constant 0 : index
      %25 = vector.load %arg6[%c0_15, %c0_16] : memref<8x128xf32, #tpu.memory_space<vmem>>, vector<8x128xf32>
      tpu.vector_store %arg6[%c0_15, %c0_16], %24 {strides = array<i32>} : memref<8x128xf32, #tpu.memory_space<vmem>>, vector<8x128xf32>,
    } else {
    }
    return
  }
  func.func @transform_0(%arg0: i32, %arg1: i32, %arg2: i32) -> (i32, i32) {
    %c0_i32 = arith.constant 0 : i32
    return %arg1, %arg2 : i32, i32
  }
  func.func @transform_1(%arg0: i32, %arg1: i32, %arg2: i32) -> (i32, i32) {
    %c0_i32 = arith.constant 0 : i32
    return %arg2, %arg0 : i32, i32
  }
  func.func @transform_2(%arg0: i32, %arg1: i32, %arg2: i32) -> (i32, i32) {
    %c0_i32 = arith.constant 0 : i32
    %c0_i32_0 = arith.constant 0 : i32
    return %c0_i32, %arg0 : i32, i32
  }
  func.func @transform_3(%arg0: i32, %arg1: i32, %arg2: i32) -> (i32, i32) {
    %c0_i32 = arith.constant 0 : i32
    return %arg1, %arg0 : i32, i32
  }
}

</mosaic_0001>

<bundles_post_ra>
// kernel: tpu_custom_call.1
= control target key start
LH: loop header
LB: loop body
LE: loop exit
PB: predicated region body
PF: predicated region fallthrough
CT: control target
= control target key end

     0   :  { %8 = vsyncpa [#allocation4], 0  ;;  %s441_s0 = inlined_call_operand.hbm [shape: f32[8,128], index: 0, kind: input, shape index: {}]   ;;  %s442_s1 = inlined_call_operand.hbm [shape: f32[128,128], index: 1, kind: input, shape index: {}]   ;;  %s443_s2 = inlined_call_operand.hbm [shape: f32[8,128], index: 2, kind: input, shape index: {}]   ;;  %s444_s3 = inlined_call_operand.hbm [shape: f32[8,128], index: 3, kind: output, shape index: {}]  }
   0x1   :  { %9 = vsyncpa [#allocation7], 0 }
   0x2   :  { %10 = vsyncpa [#allocation5], 0  ;;  %s364_s12 = smov [#allocation6]   ;;  %s270_s16 = scalar_lea.hbm %s442_s1, 2048 }
   0x3   :  { %s26_s13 = sshll.u32 %s364_s12, 4  ;;  %p271_p0 = scmp.ne.s32.totalorder %s442_s1, %s270_s16  ;;  %s27_s13 = int_to_ptr.vmem [resolvable:$true] %s26_s13 }
   0x4   :  { %p274_p1 = scmp.lt.u32.totalorder %s270_s16, %s442_s1 }
   0x6   :  { %p276_p2 = pnand %p274_p1, %p271_p0 }
   0x8   :  { %279 = shalt.err (!%p276_p2)
}
   0x9   :  { %s280_s21 = scalar_lea.vmem %s27_s13, 2048  ;;  %p285_p4 = scmp.lt.s32.totalorder %s27_s13, %s27_s13 }
   0xa   :  { %p281_p3 = scmp.ne.s32.totalorder %s27_s13, %s280_s21  ;;  %p286_p5 = scmp.lt.s32.totalorder %s280_s21, %s280_s21 }
   0xc   :  { %p287_p6 = por %p286_p5, %p285_p4 }
   0xe   :  { %p288_p7 = pnand %p287_p6, %p281_p3 }
  0x10   :  { %291 = shalt.err (!%p288_p7)
}
  0x11   :  { %s365_s22 = smov 128   ;;  %s366_s23 = smov 8  }
  0x12   :  { %32 = dma.hbm_to_vmem [thread:$0]  %s442_s1, 2048, %s27_s13, [#allocation7], %s365_s22, %s365_s22, %s366_s23  }
  0x13   :  { %s367_s26 = smov [#allocation3]   ;;  %s368_s28 = smov [#allocation8]  }
  0x14   :  { %s17_s27 = sshll.u32 %s367_s26, 4  ;;  %s39_s29 = sshll.u32 %s368_s28, 4  ;;  %s18_s27 = int_to_ptr.vmem [resolvable:$true] %s17_s27  ;;  %s40_s29 = int_to_ptr.vmem [resolvable:$true] %s39_s29 }
  0x15   :  { %s292_s5 = scalar_lea.hbm %s441_s0, 128 }
  0x16   :  { %p293_p8 = scmp.ne.s32.totalorder %s441_s0, %s292_s5  ;;  %p296_p9 = scmp.lt.u32.totalorder %s292_s5, %s441_s0 }
  0x18   :  { %p298_p10 = pnand %p296_p9, %p293_p8 }
  0x1a   :  { %301 = shalt.err (!%p298_p10)
}
  0x1b   :  { %s302_s1 = scalar_lea.vmem %s18_s27, 128  ;;  %p307_p12 = scmp.lt.s32.totalorder %s18_s27, %s18_s27 }
  0x1c   :  { %p303_p11 = scmp.ne.s32.totalorder %s18_s27, %s302_s1  ;;  %p308_p13 = scmp.lt.s32.totalorder %s302_s1, %s302_s1 }
  0x1e   :  { %p309_p0 = por %p308_p13, %p307_p12 }
  0x20   :  { %p310_p1 = pnand %p309_p0, %p303_p11 }
  0x22   :  { %313 = shalt.err (!%p310_p1)
}
  0x23   :  { %20 = dma.hbm_to_vmem [thread:$0]  %s441_s0, 128, %s18_s27, [#allocation4]  }
  0x24   :  { %s314_s14 = scalar_lea.hbm %s443_s2, 128 }
  0x25   :  { %p315_p2 = scmp.ne.s32.totalorder %s443_s2, %s314_s14  ;;  %p318_p3 = scmp.lt.u32.totalorder %s314_s14, %s443_s2 }
  0x27   :  { %p320_p4 = pnand %p318_p3, %p315_p2 }
  0x29   :  { %323 = shalt.err (!%p320_p4)
}
  0x2a   :  { %s324_s19 = scalar_lea.vmem %s40_s29, 128  ;;  %p329_p6 = scmp.lt.s32.totalorder %s40_s29, %s40_s29 }
  0x2b   :  { %p325_p5 = scmp.ne.s32.totalorder %s40_s29, %s324_s19  ;;  %p330_p7 = scmp.lt.s32.totalorder %s324_s19, %s324_s19 }
  0x2d   :  { %p331_p8 = por %p330_p7, %p329_p6 }
  0x2f   :  { %p332_p9 = pnand %p331_p8, %p325_p5 }
  0x31   :  { %335 = shalt.err (!%p332_p9)
}
  0x32   :  { %42 = dma.hbm_to_vmem [thread:$0]  %s443_s2, 128, %s40_s29, [#allocation7]  }
  0x33   :  { %358 = dma.done.wait [#allocation4], 128  }
  0x34   :  { %359 = vsyncadd [#allocation4], 4294967168 }
  0x35   :  { %360 = dma.done.wait [#allocation7], 2176  }
  0x36   :  { %361 = vsyncadd [#allocation7], 4294965120  ;;  %v369_v0 = vmov 0.0|0.0   ;;  %vm370_vm0 = vmmov 0   ;;  %v371_v1 = vmov 0.0   ;;  %v59_v2 = vld [vmem:[#allocation6] sm:$0xff]  ;;  %v152_v27 = vlaneseq }
  0x37   :  { %237 = vmatprep.subr.bf16.mxu0 %v369_v0  ;;  %234 = vmatprep.mubr.msk.f32.mxu0 %vm370_vm0, %v371_v1  ;;  %v60_v3 = vld [vmem:[#allocation6 + $0x8] sm:$0xff]  ;;  %v61_v4 = vld [vmem:[#allocation6 + $0x10] sm:$0xff]  ;;  %v62_v6 = vld [vmem:[#allocation6 + $0x18] sm:$0xff]  ;;  %s372_s2 = smov [#allocation9]  }
  0x38   :  { %v238_v5 = vpack.c.bf16 %v60_v3, %v59_v2  ;;  %v241_v7 = vpack.c.bf16 %v62_v6, %v61_v4  ;;  %v63_v8 = vld [vmem:[#allocation6 + $0x20] sm:$0xff]  ;;  %v64_v9 = vld [vmem:[#allocation6 + $0x28] sm:$0xff]  ;;  %v65_v11 = vld [vmem:[#allocation6 + $0x30] sm:$0xff]  ;;  %v153_v28 = vshrl.u32 %v152_v27, 7  ;;  %s175_s21 = sshll.u32 %s372_s2, 4  ;;  %s176_s21 = int_to_ptr.vmem [resolvable:$true] %s175_s21 }
  0x39   :  { %v244_v10 = vpack.c.bf16 %v64_v9, %v63_v8  ;;  %v66_v12 = vld [vmem:[#allocation6 + $0x38] sm:$0xff]  ;;  %v67_v14 = vld [vmem:[#allocation6 + $0x40] sm:$0xff]  ;;  %v68_v15 = vld [vmem:[#allocation6 + $0x48] sm:$0xff]  ;;  %s336_s22 = scalar_lea.vmem %s176_s21, 128  ;;  %p341_p11 = scmp.lt.s32.totalorder %s176_s21, %s176_s21 }
  0x3a   :  { %239 = vmatpush3.bf16.msra.mxu0 %v238_v5  ;;  %v247_v13 = vpack.c.bf16 %v66_v12, %v65_v11  ;;  %v250_v16 = vpack.c.bf16 %v68_v15, %v67_v14  ;;  %v69_v17 = vld [vmem:[#allocation6 + $0x50] sm:$0xff]  ;;  %v70_v18 = vld [vmem:[#allocation6 + $0x58] sm:$0xff]  ;;  %v71_v20 = vld [vmem:[#allocation6 + $0x60] sm:$0xff]  ;;  %v154_v29 = vsub.s32 0, %v153_v28  ;;  %v160_v32 = vsub.s32 1, %v153_v28  ;;  %p337_p10 = scmp.ne.s32.totalorder %s176_s21, %s336_s22  ;;  %p342_p12 = scmp.lt.s32.totalorder %s336_s22, %s336_s22 }
  0x3b   :  { %240 = vmatprep.subr.bf16.mxu0 %v369_v0  ;;  %v253_v19 = vpack.c.bf16 %v70_v18, %v69_v17  ;;  %v72_v21 = vld [vmem:[#allocation6 + $0x68] sm:$0xff]  ;;  %v73_v23 = vld [vmem:[#allocation6 + $0x70] sm:$0xff]  ;;  %v74_v24 = vld [vmem:[#allocation6 + $0x78] sm:$0xff]  ;;  %v165_v33 = vsub.s32 2, %v153_v28 }
  0x3c   :  { %v256_v22 = vpack.c.bf16 %v72_v21, %v71_v20  ;;  %v259_v25 = vpack.c.bf16 %v74_v24, %v73_v23  ;;  %v58_v26 = vld [vmem:[#allocation3] sm:$0xff]  ;;  %v150_v30 = vld [vmem:[#allocation8] sm:$0xff]  ;;  %p343_p13 = por %p342_p12, %p341_p11 }
  0x3d   :  { %v155_v31 = vrot.slane %v150_v30, %v154_v29  ;;  %v161_v36 = vrot.slane %v150_v30, %v160_v32  ;;  %v166_v39 = vrot.slane %v150_v30, %v165_v33 }
  0x3e   :  { %242 = vmatpush3.bf16.msra.mxu0 %v241_v7  ;;  %p344_p0 = pnand %p343_p13, %p337_p10 }
  0x3f   :  { %243 = vmatprep.subr.bf16.mxu0 %v369_v0 }
  0x42   :  { %245 = vmatpush3.bf16.msra.mxu0 %v244_v10 }
  0x43   :  { %246 = vmatprep.subr.bf16.mxu0 %v369_v0 }
  0x46   :  { %248 = vmatpush3.bf16.msra.mxu0 %v247_v13 }
  0x47   :  { %249 = vmatprep.subr.bf16.mxu0 %v369_v0 }
  0x4a   :  { %251 = vmatpush3.bf16.msra.mxu0 %v250_v16 }
  0x4b   :  { %252 = vmatprep.subr.bf16.mxu0 %v369_v0 }
  0x4e   :  { %254 = vmatpush3.bf16.msra.mxu0 %v253_v19 }
  0x4f   :  { %255 = vmatprep.subr.bf16.mxu0 %v369_v0 }
  0x52   :  { %257 = vmatpush3.bf16.msra.mxu0 %v256_v22 }
  0x53   :  { %258 = vmatprep.subr.bf16.mxu0 %v369_v0 }
  0x56   :  { %260 = vmatpush3.bf16.msra.mxu0 %v259_v25 }
  0x59   :  { %235 = vmatmul.mubr.f32.vlgmr.msra.gmra.mrb[0].mxu0 %v58_v26 }
 0x12c   :  { %v141_v34 = vpop.f32.mrb[0].mxu0 }
 0x12d   :  { %v156_v35 = vadd.f32 %v155_v31, %v141_v34  ;;  %v236_v37 = vpop.f32.mrb[1].mxu0 }
 0x12f   :  { %v157_v38 = vmax.f32 %v156_v35, 0.0 }
 0x131   :  { %v162_v40 = vmul.f32 %v161_v36, %v157_v38 }
 0x133   :  { %v167_v41 = vadd.f32 %v166_v39, %v162_v40 }
 0x135   :  { %168 = vst [vmem:[#allocation9] sm:$0xff] %v167_v41 }
 0x136   :  { %347 = shalt.err (!%p344_p0)
}
 0x137   :  { %s348_s25 = scalar_lea.hbm %s444_s3, 128 }
 0x138   :  { %p349_p1 = scmp.ne.s32.totalorder %s444_s3, %s348_s25  ;;  %p352_p2 = scmp.lt.u32.totalorder %s348_s25, %s444_s3 }
 0x13a   :  { %p354_p3 = pnand %p352_p2, %p349_p1 }
 0x13c   :  { %357 = shalt.err (!%p354_p3)
}
 0x13d   :  { %178 = dma.vmem_to_hbm [thread:$0]  %s176_s21, 128, %s444_s3, [#allocation5]  }
 0x13e   :  { %362 = dma.done.wait [#allocation5], 128  }
 0x13f   :  { %363 = vsyncadd [#allocation5], 4294967168 }
 0x140   :  { %182 = vsyncpa [#allocation4], 1 }
 0x141   :  { %183 = vsyncpa [#allocation7], 1 }
 0x142   :  { %184 = vsyncpa [#allocation5], 1 }

</bundles_post_ra>
